<compile_context>
chip_gen: v7x
topology: tpu7x:2x2x1
jax: 0.10.0
libtpu: 0.0.40
codegen_flags: <defaults>
</compile_context>

<pallas_src>
import jax
import jax.numpy as jnp
from jax.experimental import pallas as pl
from jax.experimental.pallas import tpu as pltpu

LANE = 128


def linear_kernel(x_ref, w_ref, b_ref, o_ref):
    # x_ref: (block_rows, 128) VMEM tile; w_ref/b_ref: (1,) f32 scalars in SMEM.
    w = w_ref[0]
    b = b_ref[0]
    o_ref[...] = x_ref[...] * w + b


def linear_forward(x, w, b, *, max_block_rows=512):
    """x: (N, 1) f32, w: (1, 1) f32, b: (1,) f32  ->  (N, 1) f32.

    Semantics of torch.nn.Linear(1, 1): y = x * w + b.
    """
    orig_shape = x.shape
    n = x.shape[0]
    dtype = x.dtype

    # --- lane-dense repack: (N, 1) -> (rows_padded, 128) zero-padded slab ---
    rows = pl.cdiv(n, LANE)
    block_rows = min(max_block_rows, rows)          # full-array block for small N
    rows_padded = pl.cdiv(rows, block_rows) * block_rows
    n_padded = rows_padded * LANE

    flat = jnp.pad(x.reshape(-1), (0, n_padded - n))
    slab = flat.reshape(rows_padded, LANE)

    grid = (rows_padded // block_rows,)

    out_slab = pl.pallas_call(
        linear_kernel,
        out_shape=jax.ShapeDtypeStruct((rows_padded, LANE), dtype),
        grid_spec=pl.GridSpec(
            grid=grid,
            in_specs=[
                pl.BlockSpec((block_rows, LANE), lambda i: (i, 0)),
                pl.BlockSpec(memory_space=pltpu.MemorySpace.SMEM),  # w scalar
                pl.BlockSpec(memory_space=pltpu.MemorySpace.SMEM),  # b scalar
            ],
            out_specs=pl.BlockSpec((block_rows, LANE), lambda i: (i, 0)),
        ),
        compiler_params=pltpu.CompilerParams(
            dimension_semantics=("parallel",),      # shards across TCs on v7x
        ),
    )(slab, w.reshape(1), b.reshape(1))

    # Un-pad and restore the (N, 1) layout expected by the PyTorch module.
    return out_slab.reshape(-1)[:n].reshape(orig_shape)


if __name__ == "__main__":
    key = jax.random.PRNGKey(0)
    kx, kw, kb = jax.random.split(key, 3)

    # Small input consistent with Linear(1, 1): batch of 8 scalar features.
    # NOTE: at this size the pallas_call launch overhead dominates; this run is a
    # correctness demo — the kernel's tiling only pays off for large N.
    x = jax.random.normal(kx, (8, 1), dtype=jnp.float32)

    # Deterministic parameter init (mirrors nn.Linear(1, 1) parameter shapes).
    w = jax.random.uniform(kw, (1, 1), dtype=jnp.float32, minval=-1.0, maxval=1.0)
    b = jax.random.uniform(kb, (1,), dtype=jnp.float32, minval=-1.0, maxval=1.0)

    out = linear_forward(x, w, b)
    jax.block_until_ready(out)

    # Cross-check against plain-JAX reference of nn.Linear semantics.
    ref = x @ w.T + b
    assert out.shape == (8, 1)
    assert jnp.allclose(out, ref, atol=1e-6), "mismatch vs reference"

    print("KERNEL_OK")
</pallas_src>

<mosaic_0001>
module attributes {stable_mosaic.version = 11 : i64} {
  func.func @linear_kernel(%arg0: i32, %arg1: memref<1x128xf32, #tpu.memory_space<vmem>>, %arg2: memref<1xf32, #tpu.memory_space<smem>>, %arg3: memref<1xf32, #tpu.memory_space<smem>>, %arg4: memref<1x128xf32, #tpu.memory_space<vmem>>) attributes {dimension_semantics = [#tpu.dimension_semantics<parallel>], iteration_bounds = array<i64: 1>, scalar_prefetch = 0 : i64, scratch_operands = 0 : i64, tpu.core_type = #tpu.core_type<tc>, window_params = [{transform_indices = @transform_0, window_bounds = array<i64: 1, 128>}, {transform_indices = @transform_1, window_bounds = array<i64: 1>}, {transform_indices = @transform_2, window_bounds = array<i64: 1>}, {transform_indices = @transform_3, window_bounds = array<i64: 1, 128>}]} {
    %c0 = arith.constant 0 : index
    %0 = memref.load %arg2[%c0] : memref<1xf32, #tpu.memory_space<smem>>
    %c0_0 = arith.constant 0 : index
    %1 = memref.load %arg3[%c0_0] : memref<1xf32, #tpu.memory_space<smem>>
    %c0_1 = arith.constant 0 : index
    %c0_2 = arith.constant 0 : index
    %2 = vector.load %arg1[%c0_1, %c0_2] : memref<1x128xf32, #tpu.memory_space<vmem>>, vector<1x128xf32>
    %3 = vector.broadcast %0 : f32 to vector<1x128xf32>
    %4 = arith.mulf %2, %3 : vector<1x128xf32>
    %5 = vector.broadcast %1 : f32 to vector<1x128xf32>
    %6 = arith.addf %4, %5 : vector<1x128xf32>
    %c0_3 = arith.constant 0 : index
    %c0_4 = arith.constant 0 : index
    %7 = vector.load %arg4[%c0_3, %c0_4] : memref<1x128xf32, #tpu.memory_space<vmem>>, vector<1x128xf32>
    tpu.vector_store %arg4[%c0_3, %c0_4], %6 {strides = array<i32>} : memref<1x128xf32, #tpu.memory_space<vmem>>, vector<1x128xf32>,
    return
  }
  func.func @transform_0(%arg0: i32) -> (i32, i32) {
    %c0_i32 = arith.constant 0 : i32
    %c0_i32_0 = arith.constant 0 : i32
    return %arg0, %c0_i32 : i32, i32
  }
  func.func @transform_1(%arg0: i32) -> i32 {
    %c0_i32 = arith.constant 0 : i32
    %c0_i32_0 = arith.constant 0 : i32
    return %c0_i32 : i32
  }
  func.func @transform_2(%arg0: i32) -> i32 {
    %c0_i32 = arith.constant 0 : i32
    %c0_i32_0 = arith.constant 0 : i32
    return %c0_i32 : i32
  }
  func.func @transform_3(%arg0: i32) -> (i32, i32) {
    %c0_i32 = arith.constant 0 : i32
    %c0_i32_0 = arith.constant 0 : i32
    return %arg0, %c0_i32 : i32, i32
  }
}

</mosaic_0001>

<bundles_post_ra>
// kernel: tpu_custom_call.1
= control target key start
LH: loop header
LB: loop body
LE: loop exit
PB: predicated region body
PF: predicated region fallthrough
CT: control target
= control target key end

     0   :  { %s106_s0 = inlined_call_operand.vmem [shape: f32[1,128], index: 0, kind: input, shape index: {}]   ;;  %s107_s1 = inlined_call_operand.<no memory space> [shape: f32[1], index: 1, kind: input, shape index: {}]   ;;  %s108_s2 = inlined_call_operand.<no memory space> [shape: f32[1], index: 2, kind: input, shape index: {}]   ;;  %s109_s3 = inlined_call_operand.hbm [shape: f32[1,128], index: 3, kind: output, shape index: {}]  }
   0x1   :  { %v19_v0 = vld [vmem:[%s106_s0] sm:$0x1]  ;;  %v20_v1 = vstv %s107_s1  ;;  %v22_v2 = vstv %s108_s2 }
   0x2   :  { %10 = vsyncpa [#allocation5], 0  ;;  %v21_v3 = vmul.f32 %v20_v1, %v19_v0  ;;  %s64_s18 = smov [#allocation4]  }
   0x3   :  { %s31_s19 = sshll.u32 %s64_s18, 4  ;;  %s32_s19 = int_to_ptr.vmem [resolvable:$true] %s31_s19 }
   0x4   :  { %v23_v4 = vadd.f32 %v22_v2, %v21_v3  ;;  %s40_s20 = scalar_lea.vmem %s32_s19, 16  ;;  %s44_s21 = scalar_lea.vmem %s32_s19, 32 }
   0x5   :  { %p41_p0 = scmp.ne.s32.totalorder %s32_s19, %s40_s20  ;;  %p45_p1 = scmp.lt.s32.totalorder %s32_s19, %s32_s19 }
   0x6   :  { %24 = vst [vmem:[#allocation4] sm:$0x1] %v23_v4  ;;  %p46_p2 = scmp.lt.s32.totalorder %s44_s21, %s40_s20 }
   0x8   :  { %p47_p3 = por %p46_p2, %p45_p1 }
   0xa   :  { %p48_p4 = pnand %p47_p3, %p41_p0 }
   0xc   :  { %51 = shalt.err (!%p48_p4)
}
   0xd   :  { %s52_s22 = scalar_lea.hbm %s109_s3, 16 }
   0xe   :  { %p53_p5 = scmp.ne.s32.totalorder %s109_s3, %s52_s22  ;;  %p56_p6 = scmp.lt.u32.totalorder %s52_s22, %s109_s3 }
  0x10   :  { %p58_p7 = pnand %p56_p6, %p53_p5 }
  0x12   :  { %61 = shalt.err (!%p58_p7)
}
  0x13   :  { %34 = dma.vmem_to_hbm [thread:$0]  %s32_s19, 16, %s109_s3, [#allocation5]  }
  0x14   :  { %62 = dma.done.wait [#allocation5], 16  }
  0x15   :  { %63 = vsyncadd [#allocation5], 4294967280 }
  0x16   :  { %38 = vsyncpa [#allocation5], 1 }

</bundles_post_ra>
